<compile_context>
chip_gen: v7x
topology: tpu7x:2x2x1
jax: 0.10.0
libtpu: 0.0.40
codegen_flags: <defaults>
</compile_context>

<pallas_src>
import jax
import jax.numpy as jnp
from jax.experimental import pallas as pl
from jax.experimental.pallas import tpu as pltpu

# ----------------------------- configuration -----------------------------
C = 16          # input channels
REDUCTION = 4
CR = C // REDUCTION
DIL = 4         # dilation (= padding) of the 3x3 convs
EPS = 1e-5      # BatchNorm eps
B, H, W = 2, 16, 16
N = H * W       # flattened spatial size per image
BN = B * N      # batch fused into the lane axis


# ------------------------------ Pallas kernel -----------------------------
def _sablock_kernel(x_ref, w1_ref, w2_ref, w3_ref, w4_ref, bias_ref,
                    mask_ref, o_ref):
    # Fuse batch into lanes: [C, B*N]; offset N=256 is 128-aligned (cheap).
    x_all = jnp.concatenate([x_ref[bi] for bi in range(B)], axis=1)   # [C, BN]

    w1 = w1_ref[...]                      # [CR, C]
    w4 = w4_ref[...]                      # [1, CR]
    b1 = bias_ref[:, 0:1]                 # [CR, 1]  (broadcasts over lanes)
    b2 = bias_ref[:, 1:2]
    b3 = bias_ref[:, 2:3]
    b4 = bias_ref[0:1, 3:4]               # [1, 1]

    # Conv1x1 + folded BN + ReLU
    t = jnp.dot(w1, x_all, preferred_element_type=jnp.float32) + b1   # [CR, BN]
    t = jnp.maximum(t, 0.0)

    def dilated_conv3x3(act, w_packed_ref, bias):
        # act: [CR, BN]; w_packed_ref: [CR, 9*CR] (tap-major columns).
        # Build the im2col operand in registers: 9 masked, lane-rolled copies
        # stacked along sublanes -> one K=36 matmul on the MXU.
        parts = []
        for tap in range(9):
            ky, kx = tap // 3, tap % 3
            s = (ky - 1) * DIL * W + (kx - 1) * DIL      # flat source offset
            shifted = act if s == 0 else pltpu.roll(act, (-s) % BN, 1)
            if tap != 4:                                 # center tap: all-valid
                shifted = shifted * mask_ref[tap]        # pre-dot masking
            parts.append(shifted)
        stacked = jnp.concatenate(parts, axis=0)         # [9*CR, BN]
        acc = jnp.dot(w_packed_ref[...], stacked,
                      preferred_element_type=jnp.float32) + bias
        return jnp.maximum(acc, 0.0)

    # Two dilated 3x3 convs + folded BN + ReLU
    t = dilated_conv3x3(t, w2_ref, b2)
    t = dilated_conv3x3(t, w3_ref, b3)

    # Final Conv1x1 -> 1 channel attention map (channel broadcast done outside)
    att = jnp.dot(w4, t, preferred_element_type=jnp.float32) + b4     # [1, BN]
    o_ref[...] = att.astype(o_ref.dtype)


def sablock_forward(x_nchw, fp):
    b, c, h, w = x_nchw.shape
    n = h * w
    bn = b * n
    x2 = x_nchw.reshape(b, c, n)                          # free reshape
    att = pl.pallas_call(
        _sablock_kernel,
        out_shape=jax.ShapeDtypeStruct((1, bn), x_nchw.dtype),
        grid_spec=pltpu.PrefetchScalarGridSpec(
            num_scalar_prefetch=0,
            grid=(1,),                                    # single fused step
            in_specs=[
                pl.BlockSpec((b, c, n), lambda i: (0, 0, 0)),        # x
                pl.BlockSpec((CR, C), lambda i: (0, 0)),             # W1
                pl.BlockSpec((CR, 9 * CR), lambda i: (0, 0)),        # W2 packed
                pl.BlockSpec((CR, 9 * CR), lambda i: (0, 0)),        # W3 packed
                pl.BlockSpec((1, CR), lambda i: (0, 0)),             # W4
                pl.BlockSpec((CR, 4), lambda i: (0, 0)),             # biases
                pl.BlockSpec((9, CR, bn), lambda i: (0, 0, 0)),      # tap masks
            ],
            out_specs=pl.BlockSpec((1, bn), lambda i: (0, 0)),
        ),
        compiler_params=pltpu.CompilerParams(
            dimension_semantics=("arbitrary",)),
    )(x2, fp["W1"], fp["W2"], fp["W3"], fp["W4"], fp["BIAS"], fp["MASK"])
    # expand_as: broadcast the 1-channel attention map over all C channels.
    return jnp.broadcast_to(att.reshape(b, 1, h, w), (b, c, h, w))


# ------------------------------ glue (JAX) --------------------------------
def fold_bn(w_oihw, b_o, gamma, beta, mean, var):
    """Fold eval-mode BatchNorm into the preceding conv (OIHW weights)."""
    scale = gamma / jnp.sqrt(var + EPS)
    w_f = w_oihw * scale[:, None, None, None]
    b_f = (b_o - mean) * scale + beta
    return w_f, b_f


def init_params(key):
    ks = jax.random.split(key, 32)
    r = lambda k, s, sc=0.1: sc * jax.random.normal(k, s, jnp.float32)
    p = {
        "w1": r(ks[0], (CR, C, 1, 1)), "b1": r(ks[1], (CR,)),
        "bn1_g": 1.0 + r(ks[2], (CR,)), "bn1_b": r(ks[3], (CR,)),
        "bn1_m": r(ks[4], (CR,)), "bn1_v": 0.5 + jnp.abs(r(ks[5], (CR,))),
        "w2": r(ks[6], (CR, CR, 3, 3)), "b2": r(ks[7], (CR,)),
        "bn2_g": 1.0 + r(ks[8], (CR,)), "bn2_b": r(ks[9], (CR,)),
        "bn2_m": r(ks[10], (CR,)), "bn2_v": 0.5 + jnp.abs(r(ks[11], (CR,))),
        "w3": r(ks[12], (CR, CR, 3, 3)), "b3": r(ks[13], (CR,)),
        "bn3_g": 1.0 + r(ks[14], (CR,)), "bn3_b": r(ks[15], (CR,)),
        "bn3_m": r(ks[16], (CR,)), "bn3_v": 0.5 + jnp.abs(r(ks[17], (CR,))),
        "w4": r(ks[18], (1, CR, 1, 1)), "b4": r(ks[19], (1,)),
    }
    return p


def build_tap_masks():
    """Per-tap validity masks for the dilated 3x3 convs, shape [9, CR, B*N]."""
    n_idx = jnp.arange(N)
    y_idx = n_idx // W
    x_idx = n_idx % W
    rows = []
    for ky in range(3):
        dy = (ky - 1) * DIL
        for kx in range(3):
            dx = (kx - 1) * DIL
            m = ((y_idx + dy >= 0) & (y_idx + dy < H) &
                 (x_idx + dx >= 0) & (x_idx + dx < W)).astype(jnp.float32)
            rows.append(m)
    mask_n = jnp.stack(rows, axis=0)                      # [9, N]
    mask_bn = jnp.tile(mask_n, (1, B))                    # [9, B*N] (per image)
    return jnp.tile(mask_bn[:, None, :], (1, CR, 1))      # [9, CR, B*N]


def fold_params(p):
    w1f, b1f = fold_bn(p["w1"], p["b1"], p["bn1_g"], p["bn1_b"], p["bn1_m"], p["bn1_v"])
    w2f, b2f = fold_bn(p["w2"], p["b2"], p["bn2_g"], p["bn2_b"], p["bn2_m"], p["bn2_v"])
    w3f, b3f = fold_bn(p["w3"], p["b3"], p["bn3_g"], p["bn3_b"], p["bn3_m"], p["bn3_v"])
    # Repack 3x3 weights to [CR, 9*CR], tap-major columns (matches the
    # in-kernel sublane stacking order of the rolled operand).
    W2 = jnp.transpose(w2f, (0, 2, 3, 1)).reshape(CR, 9 * CR)
    W3 = jnp.transpose(w3f, (0, 2, 3, 1)).reshape(CR, 9 * CR)
    b4p = jnp.concatenate([p["b4"], jnp.zeros((CR - 1,), jnp.float32)])
    BIAS = jnp.stack([b1f, b2f, b3f, b4p], axis=1)        # [CR, 4]
    return {
        "W1": w1f[:, :, 0, 0],                            # [CR, C]
        "W2": W2, "W3": W3,                               # [CR, 9*CR]
        "W4": p["w4"][:, :, 0, 0],                        # [1, CR]
        "BIAS": BIAS,                                     # [CR, 4]
        "MASK": build_tap_masks(),                        # [9, CR, B*N]
    }


# --------------------------- pure-JAX reference ----------------------------
def ref_forward(x, p):
    def conv(x, w, bias, pad, dil):
        y = jax.lax.conv_general_dilated(
            x, w, window_strides=(1, 1), padding=((pad, pad), (pad, pad)),
            rhs_dilation=(dil, dil),
            dimension_numbers=("NCHW", "OIHW", "NCHW"))
        return y + bias[None, :, None, None]

    def bn(x, g, be, m, v):
        return (x - m[None, :, None, None]) / jnp.sqrt(v[None, :, None, None] + EPS) \
               * g[None, :, None, None] + be[None, :, None, None]

    y = jax.nn.relu(bn(conv(x, p["w1"], p["b1"], 0, 1),
                       p["bn1_g"], p["bn1_b"], p["bn1_m"], p["bn1_v"]))
    y = jax.nn.relu(bn(conv(y, p["w2"], p["b2"], DIL, DIL),
                       p["bn2_g"], p["bn2_b"], p["bn2_m"], p["bn2_v"]))
    y = jax.nn.relu(bn(conv(y, p["w3"], p["b3"], DIL, DIL),
                       p["bn3_g"], p["bn3_b"], p["bn3_m"], p["bn3_v"]))
    y = conv(y, p["w4"], p["b4"], 0, 1)
    return jnp.broadcast_to(y, x.shape)


# --------------------------------- main ------------------------------------
if __name__ == "__main__":
    key = jax.random.PRNGKey(0)
    kx, kp = jax.random.split(key)
    x = jax.random.normal(kx, (B, C, H, W), jnp.float32)

    # TODO(synk): BatchNorm is applied in eval mode (folded running stats);
    # PyTorch training-mode batch statistics are not reproduced.
    params = init_params(kp)
    folded = fold_params(params)

    out = jax.block_until_ready(sablock_forward(x, folded))
    ref = jax.block_until_ready(ref_forward(x, params))

    assert out.shape == x.shape, (out.shape, x.shape)
    assert jnp.max(jnp.abs(out - ref)) < 1e-4, float(jnp.max(jnp.abs(out - ref)))
    print("KERNEL_OK")
</pallas_src>

<mosaic_0001>
module attributes {stable_mosaic.version = 11 : i64} {
  func.func @_sablock_kernel(%arg0: i32, %arg1: memref<2x16x256xf32, #tpu.memory_space<vmem>>, %arg2: memref<4x16xf32, #tpu.memory_space<vmem>>, %arg3: memref<4x36xf32, #tpu.memory_space<vmem>>, %arg4: memref<4x36xf32, #tpu.memory_space<vmem>>, %arg5: memref<1x4xf32, #tpu.memory_space<vmem>>, %arg6: memref<4x4xf32, #tpu.memory_space<vmem>>, %arg7: memref<9x4x512xf32, #tpu.memory_space<vmem>>, %arg8: memref<1x512xf32, #tpu.memory_space<vmem>>) attributes {dimension_semantics = [#tpu.dimension_semantics<arbitrary>], iteration_bounds = array<i64: 1>, scalar_prefetch = 0 : i64, scratch_operands = 0 : i64, tpu.core_type = #tpu.core_type<tc>, window_params = [{pipeline_mode = #tpu.pipeline_mode<synchronous>, transform_indices = @transform_0, window_bounds = array<i64: 2, 16, 256>}, {pipeline_mode = #tpu.pipeline_mode<synchronous>, transform_indices = @transform_1, window_bounds = array<i64: 4, 16>}, {pipeline_mode = #tpu.pipeline_mode<synchronous>, transform_indices = @transform_2, window_bounds = array<i64: 4, 36>}, {pipeline_mode = #tpu.pipeline_mode<synchronous>, transform_indices = @transform_3, window_bounds = array<i64: 4, 36>}, {pipeline_mode = #tpu.pipeline_mode<synchronous>, transform_indices = @transform_4, window_bounds = array<i64: 1, 4>}, {pipeline_mode = #tpu.pipeline_mode<synchronous>, transform_indices = @transform_5, window_bounds = array<i64: 4, 4>}, {pipeline_mode = #tpu.pipeline_mode<synchronous>, transform_indices = @transform_6, window_bounds = array<i64: 9, 4, 512>}, {pipeline_mode = #tpu.pipeline_mode<synchronous>, transform_indices = @transform_7, window_bounds = array<i64: 1, 512>}]} {
    %c0 = arith.constant 0 : index
    %c0_0 = arith.constant 0 : index
    %c0_1 = arith.constant 0 : index
    %0 = vector.load %arg1[%c0, %c0_0, %c0_1] : memref<2x16x256xf32, #tpu.memory_space<vmem>>, vector<1x16x256xf32>
    %1 = vector.shape_cast %0 : vector<1x16x256xf32> to vector<16x256xf32>
    %c1 = arith.constant 1 : index
    %c0_2 = arith.constant 0 : index
    %c0_3 = arith.constant 0 : index
    %2 = vector.load %arg1[%c1, %c0_2, %c0_3] : memref<2x16x256xf32, #tpu.memory_space<vmem>>, vector<1x16x256xf32>
    %3 = vector.shape_cast %2 : vector<1x16x256xf32> to vector<16x256xf32>
    %4 = tpu.concatenate %1, %3 in 1 : vector<16x256xf32>, vector<16x256xf32> -> vector<16x512xf32>
    %c0_4 = arith.constant 0 : index
    %c0_5 = arith.constant 0 : index
    %5 = vector.load %arg2[%c0_4, %c0_5] : memref<4x16xf32, #tpu.memory_space<vmem>>, vector<4x16xf32>
    %c0_6 = arith.constant 0 : index
    %c0_7 = arith.constant 0 : index
    %6 = vector.load %arg5[%c0_6, %c0_7] : memref<1x4xf32, #tpu.memory_space<vmem>>, vector<1x4xf32>
    %c0_8 = arith.constant 0 : index
    %c0_9 = arith.constant 0 : index
    %7 = vector.load %arg6[%c0_8, %c0_9] : memref<4x4xf32, #tpu.memory_space<vmem>>, vector<4x1xf32>
    %c0_10 = arith.constant 0 : index
    %c1_11 = arith.constant 1 : index
    %8 = vector.load %arg6[%c0_10, %c1_11] : memref<4x4xf32, #tpu.memory_space<vmem>>, vector<4x1xf32>
    %c0_12 = arith.constant 0 : index
    %c2 = arith.constant 2 : index
    %9 = vector.load %arg6[%c0_12, %c2] : memref<4x4xf32, #tpu.memory_space<vmem>>, vector<4x1xf32>
    %c0_13 = arith.constant 0 : index
    %c3 = arith.constant 3 : index
    %10 = vector.load %arg6[%c0_13, %c3] : memref<4x4xf32, #tpu.memory_space<vmem>>, vector<1x1xf32>
    %cst = arith.constant dense<0.000000e+00> : vector<4x512xf32>
    %11 = tpu.matmul %5, %4, %cst {dimension_numbers = #tpu.dot_dimension_numbers<[1], [0], [0], [1], [0, 0, 1, 1], [], []>} : vector<4x16xf32>, vector<16x512xf32>, vector<4x512xf32> -> vector<4x512xf32>
    %12 = vector.broadcast %7 : vector<4x1xf32> to vector<4x512xf32>
    %13 = arith.addf %11, %12 : vector<4x512xf32>
    %cst_14 = arith.constant 0.000000e+00 : f32
    %14 = vector.broadcast %cst_14 : f32 to vector<4x512xf32>
    %15 = arith.maximumf %13, %14 : vector<4x512xf32>
    %c68_i32 = arith.constant 68 : i32
    %16 = tpu.dynamic_rotate %15 by %c68_i32 dim 1 : vector<4x512xf32>, i32 -> vector<4x512xf32>
    %c0_15 = arith.constant 0 : index
    %c0_16 = arith.constant 0 : index
    %c0_17 = arith.constant 0 : index
    %17 = vector.load %arg7[%c0_15, %c0_16, %c0_17] : memref<9x4x512xf32, #tpu.memory_space<vmem>>, vector<1x4x512xf32>
    %18 = vector.shape_cast %17 : vector<1x4x512xf32> to vector<4x512xf32>
    %19 = arith.mulf %16, %18 : vector<4x512xf32>
    %c64_i32 = arith.constant 64 : i32
    %20 = tpu.dynamic_rotate %15 by %c64_i32 dim 1 : vector<4x512xf32>, i32 -> vector<4x512xf32>
    %c1_18 = arith.constant 1 : index
    %c0_19 = arith.constant 0 : index
    %c0_20 = arith.constant 0 : index
    %21 = vector.load %arg7[%c1_18, %c0_19, %c0_20] : memref<9x4x512xf32, #tpu.memory_space<vmem>>, vector<1x4x512xf32>
    %22 = vector.shape_cast %21 : vector<1x4x512xf32> to vector<4x512xf32>
    %23 = arith.mulf %20, %22 : vector<4x512xf32>
    %c60_i32 = arith.constant 60 : i32
    %24 = tpu.dynamic_rotate %15 by %c60_i32 dim 1 : vector<4x512xf32>, i32 -> vector<4x512xf32>
    %c2_21 = arith.constant 2 : index
    %c0_22 = arith.constant 0 : index
    %c0_23 = arith.constant 0 : index
    %25 = vector.load %arg7[%c2_21, %c0_22, %c0_23] : memref<9x4x512xf32, #tpu.memory_space<vmem>>, vector<1x4x512xf32>
    %26 = vector.shape_cast %25 : vector<1x4x512xf32> to vector<4x512xf32>
    %27 = arith.mulf %24, %26 : vector<4x512xf32>
    %c4_i32 = arith.constant 4 : i32
    %28 = tpu.dynamic_rotate %15 by %c4_i32 dim 1 : vector<4x512xf32>, i32 -> vector<4x512xf32>
    %c3_24 = arith.constant 3 : index
    %c0_25 = arith.constant 0 : index
    %c0_26 = arith.constant 0 : index
    %29 = vector.load %arg7[%c3_24, %c0_25, %c0_26] : memref<9x4x512xf32, #tpu.memory_space<vmem>>, vector<1x4x512xf32>
    %30 = vector.shape_cast %29 : vector<1x4x512xf32> to vector<4x512xf32>
    %31 = arith.mulf %28, %30 : vector<4x512xf32>
    %c508_i32 = arith.constant 508 : i32
    %32 = tpu.dynamic_rotate %15 by %c508_i32 dim 1 : vector<4x512xf32>, i32 -> vector<4x512xf32>
    %c5 = arith.constant 5 : index
    %c0_27 = arith.constant 0 : index
    %c0_28 = arith.constant 0 : index
    %33 = vector.load %arg7[%c5, %c0_27, %c0_28] : memref<9x4x512xf32, #tpu.memory_space<vmem>>, vector<1x4x512xf32>
    %34 = vector.shape_cast %33 : vector<1x4x512xf32> to vector<4x512xf32>
    %35 = arith.mulf %32, %34 : vector<4x512xf32>
    %c452_i32 = arith.constant 452 : i32
    %36 = tpu.dynamic_rotate %15 by %c452_i32 dim 1 : vector<4x512xf32>, i32 -> vector<4x512xf32>
    %c6 = arith.constant 6 : index
    %c0_29 = arith.constant 0 : index
    %c0_30 = arith.constant 0 : index
    %37 = vector.load %arg7[%c6, %c0_29, %c0_30] : memref<9x4x512xf32, #tpu.memory_space<vmem>>, vector<1x4x512xf32>
    %38 = vector.shape_cast %37 : vector<1x4x512xf32> to vector<4x512xf32>
    %39 = arith.mulf %36, %38 : vector<4x512xf32>
    %c448_i32 = arith.constant 448 : i32
    %40 = tpu.dynamic_rotate %15 by %c448_i32 dim 1 : vector<4x512xf32>, i32 -> vector<4x512xf32>
    %c7 = arith.constant 7 : index
    %c0_31 = arith.constant 0 : index
    %c0_32 = arith.constant 0 : index
    %41 = vector.load %arg7[%c7, %c0_31, %c0_32] : memref<9x4x512xf32, #tpu.memory_space<vmem>>, vector<1x4x512xf32>
    %42 = vector.shape_cast %41 : vector<1x4x512xf32> to vector<4x512xf32>
    %43 = arith.mulf %40, %42 : vector<4x512xf32>
    %c444_i32 = arith.constant 444 : i32
    %44 = tpu.dynamic_rotate %15 by %c444_i32 dim 1 : vector<4x512xf32>, i32 -> vector<4x512xf32>
    %c8 = arith.constant 8 : index
    %c0_33 = arith.constant 0 : index
    %c0_34 = arith.constant 0 : index
    %45 = vector.load %arg7[%c8, %c0_33, %c0_34] : memref<9x4x512xf32, #tpu.memory_space<vmem>>, vector<1x4x512xf32>
    %46 = vector.shape_cast %45 : vector<1x4x512xf32> to vector<4x512xf32>
    %47 = arith.mulf %44, %46 : vector<4x512xf32>
    %48 = tpu.concatenate %19, %23, %27, %31, %15, %35, %39, %43, %47 in 0 : vector<4x512xf32>, vector<4x512xf32>, vector<4x512xf32>, vector<4x512xf32>, vector<4x512xf32>, vector<4x512xf32>, vector<4x512xf32>, vector<4x512xf32>, vector<4x512xf32> -> vector<36x512xf32>
    %c0_35 = arith.constant 0 : index
    %c0_36 = arith.constant 0 : index
    %49 = vector.load %arg3[%c0_35, %c0_36] : memref<4x36xf32, #tpu.memory_space<vmem>>, vector<4x36xf32>
    %cst_37 = arith.constant dense<0.000000e+00> : vector<4x512xf32>
    %50 = tpu.matmul %49, %48, %cst_37 {dimension_numbers = #tpu.dot_dimension_numbers<[1], [0], [0], [1], [0, 0, 1, 1], [], []>} : vector<4x36xf32>, vector<36x512xf32>, vector<4x512xf32> -> vector<4x512xf32>
    %51 = vector.broadcast %8 : vector<4x1xf32> to vector<4x512xf32>
    %52 = arith.addf %50, %51 : vector<4x512xf32>
    %cst_38 = arith.constant 0.000000e+00 : f32
    %53 = vector.broadcast %cst_38 : f32 to vector<4x512xf32>
    %54 = arith.maximumf %52, %53 : vector<4x512xf32>
    %c68_i32_39 = arith.constant 68 : i32
    %55 = tpu.dynamic_rotate %54 by %c68_i32_39 dim 1 : vector<4x512xf32>, i32 -> vector<4x512xf32>
    %c0_40 = arith.constant 0 : index
    %c0_41 = arith.constant 0 : index
    %c0_42 = arith.constant 0 : index
    %56 = vector.load %arg7[%c0_40, %c0_41, %c0_42] : memref<9x4x512xf32, #tpu.memory_space<vmem>>, vector<1x4x512xf32>
    %57 = vector.shape_cast %56 : vector<1x4x512xf32> to vector<4x512xf32>
    %58 = arith.mulf %55, %57 : vector<4x512xf32>
    %c64_i32_43 = arith.constant 64 : i32
    %59 = tpu.dynamic_rotate %54 by %c64_i32_43 dim 1 : vector<4x512xf32>, i32 -> vector<4x512xf32>
    %c1_44 = arith.constant 1 : index
    %c0_45 = arith.constant 0 : index
    %c0_46 = arith.constant 0 : index
    %60 = vector.load %arg7[%c1_44, %c0_45, %c0_46] : memref<9x4x512xf32, #tpu.memory_space<vmem>>, vector<1x4x512xf32>
    %61 = vector.shape_cast %60 : vector<1x4x512xf32> to vector<4x512xf32>
    %62 = arith.mulf %59, %61 : vector<4x512xf32>
    %c60_i32_47 = arith.constant 60 : i32
    %63 = tpu.dynamic_rotate %54 by %c60_i32_47 dim 1 : vector<4x512xf32>, i32 -> vector<4x512xf32>
    %c2_48 = arith.constant 2 : index
    %c0_49 = arith.constant 0 : index
    %c0_50 = arith.constant 0 : index
    %64 = vector.load %arg7[%c2_48, %c0_49, %c0_50] : memref<9x4x512xf32, #tpu.memory_space<vmem>>, vector<1x4x512xf32>
    %65 = vector.shape_cast %64 : vector<1x4x512xf32> to vector<4x512xf32>
    %66 = arith.mulf %63, %65 : vector<4x512xf32>
    %c4_i32_51 = arith.constant 4 : i32
    %67 = tpu.dynamic_rotate %54 by %c4_i32_51 dim 1 : vector<4x512xf32>, i32 -> vector<4x512xf32>
    %c3_52 = arith.constant 3 : index
    %c0_53 = arith.constant 0 : index
    %c0_54 = arith.constant 0 : index
    %68 = vector.load %arg7[%c3_52, %c0_53, %c0_54] : memref<9x4x512xf32, #tpu.memory_space<vmem>>, vector<1x4x512xf32>
    %69 = vector.shape_cast %68 : vector<1x4x512xf32> to vector<4x512xf32>
    %70 = arith.mulf %67, %69 : vector<4x512xf32>
    %c508_i32_55 = arith.constant 508 : i32
    %71 = tpu.dynamic_rotate %54 by %c508_i32_55 dim 1 : vector<4x512xf32>, i32 -> vector<4x512xf32>
    %c5_56 = arith.constant 5 : index
    %c0_57 = arith.constant 0 : index
    %c0_58 = arith.constant 0 : index
    %72 = vector.load %arg7[%c5_56, %c0_57, %c0_58] : memref<9x4x512xf32, #tpu.memory_space<vmem>>, vector<1x4x512xf32>
    %73 = vector.shape_cast %72 : vector<1x4x512xf32> to vector<4x512xf32>
    %74 = arith.mulf %71, %73 : vector<4x512xf32>
    %c452_i32_59 = arith.constant 452 : i32
    %75 = tpu.dynamic_rotate %54 by %c452_i32_59 dim 1 : vector<4x512xf32>, i32 -> vector<4x512xf32>
    %c6_60 = arith.constant 6 : index
    %c0_61 = arith.constant 0 : index
    %c0_62 = arith.constant 0 : index
    %76 = vector.load %arg7[%c6_60, %c0_61, %c0_62] : memref<9x4x512xf32, #tpu.memory_space<vmem>>, vector<1x4x512xf32>
    %77 = vector.shape_cast %76 : vector<1x4x512xf32> to vector<4x512xf32>
    %78 = arith.mulf %75, %77 : vector<4x512xf32>
    %c448_i32_63 = arith.constant 448 : i32
    %79 = tpu.dynamic_rotate %54 by %c448_i32_63 dim 1 : vector<4x512xf32>, i32 -> vector<4x512xf32>
    %c7_64 = arith.constant 7 : index
    %c0_65 = arith.constant 0 : index
    %c0_66 = arith.constant 0 : index
    %80 = vector.load %arg7[%c7_64, %c0_65, %c0_66] : memref<9x4x512xf32, #tpu.memory_space<vmem>>, vector<1x4x512xf32>
    %81 = vector.shape_cast %80 : vector<1x4x512xf32> to vector<4x512xf32>
    %82 = arith.mulf %79, %81 : vector<4x512xf32>
    %c444_i32_67 = arith.constant 444 : i32
    %83 = tpu.dynamic_rotate %54 by %c444_i32_67 dim 1 : vector<4x512xf32>, i32 -> vector<4x512xf32>
    %c8_68 = arith.constant 8 : index
    %c0_69 = arith.constant 0 : index
    %c0_70 = arith.constant 0 : index
    %84 = vector.load %arg7[%c8_68, %c0_69, %c0_70] : memref<9x4x512xf32, #tpu.memory_space<vmem>>, vector<1x4x512xf32>
    %85 = vector.shape_cast %84 : vector<1x4x512xf32> to vector<4x512xf32>
    %86 = arith.mulf %83, %85 : vector<4x512xf32>
    %87 = tpu.concatenate %58, %62, %66, %70, %54, %74, %78, %82, %86 in 0 : vector<4x512xf32>, vector<4x512xf32>, vector<4x512xf32>, vector<4x512xf32>, vector<4x512xf32>, vector<4x512xf32>, vector<4x512xf32>, vector<4x512xf32>, vector<4x512xf32> -> vector<36x512xf32>
    %c0_71 = arith.constant 0 : index
    %c0_72 = arith.constant 0 : index
    %88 = vector.load %arg4[%c0_71, %c0_72] : memref<4x36xf32, #tpu.memory_space<vmem>>, vector<4x36xf32>
    %cst_73 = arith.constant dense<0.000000e+00> : vector<4x512xf32>
    %89 = tpu.matmul %88, %87, %cst_73 {dimension_numbers = #tpu.dot_dimension_numbers<[1], [0], [0], [1], [0, 0, 1, 1], [], []>} : vector<4x36xf32>, vector<36x512xf32>, vector<4x512xf32> -> vector<4x512xf32>
    %90 = vector.broadcast %9 : vector<4x1xf32> to vector<4x512xf32>
    %91 = arith.addf %89, %90 : vector<4x512xf32>
    %cst_74 = arith.constant 0.000000e+00 : f32
    %92 = vector.broadcast %cst_74 : f32 to vector<4x512xf32>
    %93 = arith.maximumf %91, %92 : vector<4x512xf32>
    %cst_75 = arith.constant dense<0.000000e+00> : vector<1x512xf32>
    %94 = tpu.matmul %6, %93, %cst_75 {dimension_numbers = #tpu.dot_dimension_numbers<[1], [0], [0], [1], [0, 0, 1, 1], [], []>} : vector<1x4xf32>, vector<4x512xf32>, vector<1x512xf32> -> vector<1x512xf32>
    %95 = vector.broadcast %10 : vector<1x1xf32> to vector<1x512xf32>
    %96 = arith.addf %94, %95 : vector<1x512xf32>
    %c0_76 = arith.constant 0 : index
    %c0_77 = arith.constant 0 : index
    %97 = vector.load %arg8[%c0_76, %c0_77] : memref<1x512xf32, #tpu.memory_space<vmem>>, vector<1x512xf32>
    tpu.vector_store %arg8[%c0_76, %c0_77], %96 {strides = array<i32>} : memref<1x512xf32, #tpu.memory_space<vmem>>, vector<1x512xf32>,
    return
  }
  func.func @transform_0(%arg0: i32) -> (i32, i32, i32) {
    %c0_i32 = arith.constant 0 : i32
    %c0_i32_0 = arith.constant 0 : i32
    %c0_i32_1 = arith.constant 0 : i32
    %c0_i32_2 = arith.constant 0 : i32
    return %c0_i32, %c0_i32_0, %c0_i32_1 : i32, i32, i32
  }
  func.func @transform_1(%arg0: i32) -> (i32, i32) {
    %c0_i32 = arith.constant 0 : i32
    %c0_i32_0 = arith.constant 0 : i32
    %c0_i32_1 = arith.constant 0 : i32
    return %c0_i32, %c0_i32_0 : i32, i32
  }
  func.func @transform_2(%arg0: i32) -> (i32, i32) {
    %c0_i32 = arith.constant 0 : i32
    %c0_i32_0 = arith.constant 0 : i32
    %c0_i32_1 = arith.constant 0 : i32
    return %c0_i32, %c0_i32_0 : i32, i32
  }
  func.func @transform_3(%arg0: i32) -> (i32, i32) {
    %c0_i32 = arith.constant 0 : i32
    %c0_i32_0 = arith.constant 0 : i32
    %c0_i32_1 = arith.constant 0 : i32
    return %c0_i32, %c0_i32_0 : i32, i32
  }
  func.func @transform_4(%arg0: i32) -> (i32, i32) {
    %c0_i32 = arith.constant 0 : i32
    %c0_i32_0 = arith.constant 0 : i32
    %c0_i32_1 = arith.constant 0 : i32
    return %c0_i32, %c0_i32_0 : i32, i32
  }
  func.func @transform_5(%arg0: i32) -> (i32, i32) {
    %c0_i32 = arith.constant 0 : i32
    %c0_i32_0 = arith.constant 0 : i32
    %c0_i32_1 = arith.constant 0 : i32
    return %c0_i32, %c0_i32_0 : i32, i32
  }
  func.func @transform_6(%arg0: i32) -> (i32, i32, i32) {
    %c0_i32 = arith.constant 0 : i32
    %c0_i32_0 = arith.constant 0 : i32
    %c0_i32_1 = arith.constant 0 : i32
    %c0_i32_2 = arith.constant 0 : i32
    return %c0_i32, %c0_i32_0, %c0_i32_1 : i32, i32, i32
  }
  func.func @transform_7(%arg0: i32) -> (i32, i32) {
    %c0_i32 = arith.constant 0 : i32
    %c0_i32_0 = arith.constant 0 : i32
    %c0_i32_1 = arith.constant 0 : i32
    return %c0_i32, %c0_i32_0 : i32, i32
  }
}

</mosaic_0001>

<bundles_post_ra>
// kernel: tpu_custom_call.1
= control target key start
LH: loop header
LB: loop body
LE: loop exit
PB: predicated region body
PF: predicated region fallthrough
CT: control target
= control target key end

     0   :  { %12 = vsyncpa [#allocation3], 0  ;;  %s1971_s0 = inlined_call_operand.hbm [shape: f32[2,16,256], index: 0, kind: input, shape index: {}]   ;;  %s1972_s1 = inlined_call_operand.hbm [shape: f32[4,16], index: 1, kind: input, shape index: {}]   ;;  %s1973_s2 = inlined_call_operand.vmem [shape: f32[4,36], index: 2, kind: input, shape index: {}]   ;;  %s1974_s3 = inlined_call_operand.vmem [shape: f32[4,36], index: 3, kind: input, shape index: {}]   ;;  %s1975_s4 = inlined_call_operand.vmem [shape: f32[1,4], index: 4, kind: input, shape index: {}]   ;;  %s1976_s5 = inlined_call_operand.vmem [shape: f32[4,4], index: 5, kind: input, shape index: {}]   ;;  %s1977_s6 = inlined_call_operand.hbm [shape: f32[9,4,512], index: 6, kind: input, shape index: {}]   ;;  %s1978_s7 = inlined_call_operand.hbm [shape: f32[1,512], index: 7, kind: output, shape index: {}]  }
   0x1   :  { %13 = vsyncpa [#allocation6], 0 }
   0x2   :  { %14 = vsyncpa [#allocation4], 0  ;;  %s1363_s24 = smov [#allocation5]   ;;  %s1364_s26 = smov [#allocation2]  }
   0x3   :  { %s33_s25 = sshll.u32 %s1363_s24, 4  ;;  %s20_s27 = sshll.u32 %s1364_s26, 4  ;;  %s34_s25 = int_to_ptr.vmem [resolvable:$true] %s33_s25  ;;  %s1420_s27 = int_to_ptr.vmem [resolvable:$true] %s20_s27 }
   0x4   :  { %s1269_s30 = scalar_lea.hbm %s1972_s1, 64 }
   0x5   :  { %p1270_p0 = scmp.ne.s32.totalorder %s1972_s1, %s1269_s30  ;;  %p1273_p1 = scmp.lt.u32.totalorder %s1269_s30, %s1972_s1 }
   0x7   :  { %p1275_p2 = pnand %p1273_p1, %p1270_p0 }
   0x9   :  { %1278 = shalt.err (!%p1275_p2)
}
   0xa   :  { %s1279_s12 = scalar_lea.vmem %s34_s25, 64  ;;  %p1284_p4 = scmp.lt.s32.totalorder %s34_s25, %s34_s25 }
   0xb   :  { %p1280_p3 = scmp.ne.s32.totalorder %s34_s25, %s1279_s12  ;;  %p1285_p5 = scmp.lt.s32.totalorder %s1279_s12, %s1279_s12 }
   0xd   :  { %p1286_p6 = por %p1285_p5, %p1284_p4 }
   0xf   :  { %p1287_p7 = pnand %p1286_p6, %p1280_p3 }
  0x11   :  { %1290 = shalt.err (!%p1287_p7)
}
  0x12   :  { %36 = dma.hbm_to_vmem [thread:$0]  %s1972_s1, 64, %s34_s25, [#allocation6]  }
  0x13   :  { %s1291_s17 = scalar_lea.hbm %s1971_s0, 1024 }
  0x14   :  { %p1292_p8 = scmp.ne.s32.totalorder %s1971_s0, %s1291_s17  ;;  %p1295_p9 = scmp.lt.u32.totalorder %s1291_s17, %s1971_s0 }
  0x16   :  { %p1297_p10 = pnand %p1295_p9, %p1292_p8 }
  0x18   :  { %1300 = shalt.err (!%p1297_p10)
}
  0x19   :  { %s1301_s22 = scalar_lea.vmem %s1420_s27, 1024  ;;  %p1306_p12 = scmp.lt.s32.totalorder %s1420_s27, %s1420_s27 }
  0x1a   :  { %p1302_p11 = scmp.ne.s32.totalorder %s1420_s27, %s1301_s22  ;;  %p1307_p13 = scmp.lt.s32.totalorder %s1301_s22, %s1301_s22 }
  0x1c   :  { %p1308_p0 = por %p1307_p13, %p1306_p12 }
  0x1e   :  { %p1309_p1 = pnand %p1308_p0, %p1302_p11 }
  0x20   :  { %1312 = shalt.err (!%p1309_p1)
}
  0x21   :  { %s1365_s1 = smov 256   ;;  %s1366_s23 = smov 16  }
  0x22   :  { %26 = dma.hbm_to_vmem [thread:$0]  %s1971_s0, 1024, %s1420_s27, [#allocation3], %s1365_s1, %s1365_s1, %s1366_s23  }
  0x23   :  { %s1367_s26 = smov [#allocation7]   ;;  %s1313_s8 = scalar_lea.hbm %s1977_s6, 2304 }
  0x24   :  { %s50_s28 = sshll.u32 %s1367_s26, 4  ;;  %p1314_p2 = scmp.ne.s32.totalorder %s1977_s6, %s1313_s8  ;;  %s51_s28 = int_to_ptr.vmem [resolvable:$true] %s50_s28 }
  0x25   :  { %p1317_p3 = scmp.lt.u32.totalorder %s1313_s8, %s1977_s6 }
  0x27   :  { %p1319_p4 = pnand %p1317_p3, %p1314_p2 }
  0x29   :  { %1322 = shalt.err (!%p1319_p4)
}
  0x2a   :  { %s1323_s13 = scalar_lea.vmem %s51_s28, 2304  ;;  %p1328_p6 = scmp.lt.s32.totalorder %s51_s28, %s51_s28 }
  0x2b   :  { %p1324_p5 = scmp.ne.s32.totalorder %s51_s28, %s1323_s13  ;;  %p1329_p7 = scmp.lt.s32.totalorder %s1323_s13, %s1323_s13 }
  0x2d   :  { %p1330_p8 = por %p1329_p7, %p1328_p6 }
  0x2f   :  { %p1331_p9 = pnand %p1330_p8, %p1324_p5 }
  0x31   :  { %1334 = shalt.err (!%p1331_p9)
}
  0x32   :  { %56 = dma.hbm_to_vmem [thread:$0]  %s1977_s6, 2304, %s51_s28, [#allocation6], %s1365_s1, %s1365_s1, %s1366_s23  }
  0x33   :  { %1357 = dma.done.wait [#allocation3], 1024  }
  0x34   :  { %1358 = vsyncadd [#allocation3], 4294966272 }
  0x35   :  { %1359 = dma.done.wait [#allocation6], 2368  }
  0x36   :  { %1360 = vsyncadd [#allocation6], 4294964928  ;;  %v1981_v0 = vmov 0.0   ;;  %v1369_v1 = vmov 0   ;;  %v67_v2 = vld [vmem:[#allocation2 + $0x8] sm:$0xff]  ;;  %v69_v3 = vld [vmem:[#allocation2 + $0x18] sm:$0xff]  ;;  %v1979_v34 = vlaneseq }
  0x37   :  { %152 = vmatprep.mubr.f32.mxu0 %v1981_v0  ;;  %223 = vmatprep.mubr.f32.mxu1 %v1981_v0  ;;  %v72_v4 = vld [vmem:[#allocation2 + $0x28] sm:$0xff]  ;;  %v1191_v5 = vpack.c.bf16 %v69_v3, %v67_v2  ;;  %v74_v6 = vld [vmem:[#allocation2 + $0x38] sm:$0xff]  ;;  %v66_v7 = vld [vmem:[#allocation2] sm:$0xff]  ;;  %vm84_vm0 = vcmask 130048   ;;  %s1370_s15 = smov 64   ;;  %s1371_s16 = smov 4  }
  0x38   :  { %1248 = vset.pattern.permute.xlu0 %v1369_v1  ;;  %v68_v8 = vld [vmem:[#allocation2 + $0x10] sm:$0xff]  ;;  %v1195_v9 = vpack.c.bf16 %v74_v6, %v72_v4  ;;  %v71_v11 = vld [vmem:[#allocation2 + $0x20] sm:$0xff]  ;;  %s1372_s17 = smov 68   ;;  %s1373_s18 = smov 60   ;;  %v1375_v29 = vmov 1   ;;  %v1527_v37 = vand.u32 127, %v1979_v34 }
  0x39   :  { %v1193_v10 = vpack.c.bf16 %v68_v8, %v66_v7  ;;  %v73_v12 = vld [vmem:[#allocation2 + $0x30] sm:$0xff]  ;;  %1192 = vmatprep.subr.bf16.mxu0 %v1191_v5  ;;  %v1468_v14 = vld [vmem:[%s1976_s5] sm:$0xf]  ;;  %s1374_s19 = smov 124   ;;  %1249 = vset.pattern.permute.xlu1 %v1375_v29  ;;  %v1538_v45 = vld [vmem:[#allocation7] sm:$0xff]  ;;  %vm452_vm4 = vcmask 1043456  }
  0x3a   :  { %v1197_v13 = vpack.c.bf16 %v73_v12, %v71_v11  ;;  %1196 = vmatprep.subr.bf16.mxu1 %v1195_v9  ;;  %v75_v15 = vld [vmem:[#allocation5] sm:$0xf]  ;;  %81 = vperm.xlu0 %1248, %v1468_v14   ;;  %vm269_vm1 = vcmp.lt.s32.totalorder %v1527_v37, 64  ;;  %v1536_v42 = vld [vmem:[#allocation7 + $0x30] sm:$0xff]  ;;  %v1540_v46 = vld [vmem:[#allocation7 + $0x60] sm:$0xff]  ;;  %vm321_vm2 = vcmp.lt.s32.totalorder %v1527_v37, 4  ;;  %v1580_v59 = vcombine.high %v1538_v45, %v1538_v45 }
  0x3b   :  { %1194 = vmatpush1.bf16.msra.mxu0 %v1193_v10  ;;  %v1531_v40 = vld [vmem:[#allocation7 + $0x18] sm:$0xff]  ;;  %1997 = vst [vmem:[#allocation13_spill] sm:$0xff] %v1536_v42  ;;  %1998 = vst [vmem:[#allocation14_spill] sm:$0xff] %v1540_v46  ;;  %v1553_v50 = vld [vmem:[#allocation7 + $0x68] sm:$0xff]  ;;  %v1564_v54 = vcombine.high %v1536_v42, %v1536_v42  ;;  %vm244_vm3 = vcmp.lt.s32.totalorder %v1527_v37, 68  ;;  %v1584_v60 = vcombine.high %v1540_v46, %v1540_v46  ;;  %vm295_vm5 = vcmp.lt.s32.totalorder %v1527_v37, 60 }
  0x3c   :  { %1198 = vmatpush1.bf16.msra.mxu1 %v1197_v13  ;;  %v1533_v41 = vld [vmem:[#allocation7 + $0x78] sm:$0xff]  ;;  %v1544_v47 = vcombine.high %v1531_v40, %v1531_v40  ;;  %v1555_v51 = vld [vmem:[#allocation7 + $0x20] sm:$0xff]  ;;  %v1557_v52 = vld [vmem:[#allocation7 + $0x10] sm:$0xff]  ;;  %2003 = vst [vmem:[#allocation19_spill] sm:$0xff] %v1580_v59  ;;  %v1592_v1 = vcombine.high %v1553_v50, %v1553_v50  ;;  %vm347_vm6 = vcmp.lt.s32.totalorder %v1527_v37, 124  ;;  %vm474_vm7 = vcmask 293888  }
  0x3d   :  { %1996 = vst [vmem:[#allocation12_spill] sm:$0xff] %v1533_v41  ;;  %v1548_v48 = vcombine.high %v1533_v41, %v1533_v41  ;;  %v1551_v49 = vld [vmem:[#allocation7 + $0x38] sm:$0xff]  ;;  %2000 = vst [vmem:[#allocation16_spill] sm:$0xff] %v1555_v51  ;;  %v1571_v56 = vld [vmem:[#allocation7 + $0x8] sm:$0xff]  ;;  %v1597_v2 = vcombine.high %v1555_v51, %v1555_v51  ;;  %vm963_vm8 = vcmask 31744  }
  0x3e   :  { %1171 = vmatmul.mubr.msk.f32.vlgmr.msra.gmra.mrb[0].mxu0 %vm84_vm0, %v75_v15  ;;  %v1568_v55 = vcombine.high %v1551_v49, %v1551_v49  ;;  %2002 = vst [vmem:[#allocation18_spill] sm:$0xff] %v1571_v56  ;;  %v1573_v57 = vld [vmem:[#allocation7 + $0x80] sm:$0xff]  ;;  %2004 = vst [vmem:[#allocation20_spill] sm:$0xff] %v1584_v60  ;;  %v1588_v61 = vcombine.high %v1571_v56, %v1571_v56  ;;  %v1599_v3 = vld [vmem:[#allocation7 + $0x88] sm:$0xff] }
  0x3f   :  { %1172 = vmatmul.mubr.msk.f32.vlgmr.msra.gmra.mrb[0].mxu1 %vm84_vm0, %v75_v15  ;;  %554 = vmatprep.mubr.f32.mxu0 %v1981_v0  ;;  %1999 = vst [vmem:[#allocation15_spill] sm:$0xff] %v1548_v48  ;;  %v1610_v7 = vcombine.high %v1573_v57, %v1573_v57  ;;  %v1612_v8 = vld [vmem:[#allocation7 + $0x70] sm:$0xff]  ;;  %v1622_v13 = vld [vmem:[#allocation7 + $0x28] sm:$0xff] }
  0x40   :  { %625 = vmatprep.mubr.f32.mxu1 %v1981_v0  ;;  %2001 = vst [vmem:[#allocation17_spill] sm:$0xff] %v1568_v55  ;;  %2005 = vst [vmem:[#allocation21_spill] sm:$0xff] %v1588_v61  ;;  %v1649_v29 = vcombine.high %v1612_v8, %v1612_v8 }
  0x41   :  { %2006 = vst [vmem:[#allocation22_spill] sm:$0xff] %v1622_v13 }
  0xb9   :  { %v82_v16 = vpop.permute.xlu0 %81 }
 0x111   :  { %v154_v17 = vpop.f32.mrb[0].mxu0 }
 0x112   :  { %v155_v18 = vadd.f32 %v154_v17, %v82_v16  ;;  %v225_v19 = vpop.f32.mrb[0].mxu1  ;;  %v156_v20 = vpop.f32.mrb[1].mxu0  ;;  %v1629_v17 = vcombine.high %v1622_v13, %v1622_v13 }
 0x113   :  { %v226_v21 = vadd.f32 %v225_v19, %v82_v16  ;;  %v227_v22 = vpop.f32.mrb[1].mxu1  ;;  %v157_v26 = vadd.f32 %v156_v20, %v82_v16  ;;  %v1637_v19 = vcombine.high %v1557_v52, %v1557_v52  ;;  %v1639_v20 = vld [vmem:[#allocation7 + $0x58] sm:$0xff] }
 0x114   :  { %v1473_v23 = vmax.f32 %v155_v18, 0.0  ;;  %v228_v24 = vadd.f32 %v227_v22, %v82_v16  ;;  %2007 = vst [vmem:[#allocation23_spill] sm:$0xff] %v1629_v17  ;;  %v1633_v18 = vcombine.high %v1599_v3, %v1599_v3 }
 0x115   :  { %v1475_v25 = vmax.f32 %v226_v21, 0.0  ;;  %v1487_v28 = vmax.f32 %v157_v26, 0.0 }
 0x116   :  { %261 = vrot.lane.b32.xlu0 %v1473_v23, %s1370_s15  ;;  %v1481_v27 = vmax.f32 %v228_v24, 0.0 }
 0x117   :  { %265 = vrot.lane.b32.xlu1 %v1475_v25, %s1370_s15 }
 0x11a   :  { %267 = vrot.lane.b32.xlu0 %v1481_v27, %s1370_s15 }
 0x11b   :  { %313 = vrot.lane.b32.xlu1 %v1473_v23, %s1371_s16 }
 0x11e   :  { %315 = vrot.lane.b32.xlu0 %v1487_v28, %s1371_s16 }
 0x11f   :  { %317 = vrot.lane.b32.xlu1 %v1475_v25, %s1371_s16 }
 0x122   :  { %319 = vrot.lane.b32.xlu0 %v1481_v27, %s1371_s16 }
 0x123   :  { %234 = vrot.lane.b32.xlu1 %v1473_v23, %s1372_s17 }
 0x126   :  { %236 = vrot.lane.b32.xlu0 %v1487_v28, %s1372_s17 }
 0x127   :  { %238 = vrot.lane.b32.xlu1 %v1475_v25, %s1372_s17 }
 0x12a   :  { %240 = vrot.lane.b32.xlu0 %v1481_v27, %s1372_s17 }
 0x12b   :  { %287 = vrot.lane.b32.xlu1 %v1473_v23, %s1373_s18 }
 0x12e   :  { %289 = vrot.lane.b32.xlu0 %v1487_v28, %s1373_s18 }
 0x12f   :  { %291 = vrot.lane.b32.xlu1 %v1475_v25, %s1373_s18 }
 0x132   :  { %293 = vrot.lane.b32.xlu0 %v1481_v27, %s1373_s18 }
 0x133   :  { %339 = vrot.lane.b32.xlu1 %v1473_v23, %s1374_s19 }
 0x136   :  { %341 = vrot.lane.b32.xlu0 %v1487_v28, %s1374_s19 }
 0x137   :  { %263 = vrot.lane.b32.xlu1 %v1487_v28, %s1370_s15 }
 0x13a   :  { %345 = vrot.lane.b32.xlu0 %v1481_v27, %s1374_s19 }
 0x13b   :  { %343 = vrot.lane.b32.xlu1 %v1475_v25, %s1374_s19 }
 0x13f   :  { %471 = vperm.xlu1 %1249, %v1468_v14  }
 0x188   :  { %v1522_v30 = vpop.permute.xlu0 %261 }
 0x189   :  { %v1524_v31 = vpop.permute.xlu1 %265 }
 0x18c   :  { %v268_v32 = vpop.permute.xlu0 %267 }
 0x18d   :  { %v314_v33 = vpop.permute.xlu1 %313  ;;  %v273_v53 = vsel %vm269_vm1, %v268_v32, %v1522_v30  ;;  %v270_v58 = vsel %vm269_vm1, %v1524_v31, %v268_v32  ;;  %v1651_v32 = vld [vmem:[#allocation7 + $0x50] sm:$0xff] }
 0x18e   :  { %v1602_v4 = vmul.f32 %v1557_v52, %v273_v53  ;;  %v286_v9 = vmul.f32 %v1544_v47, %v270_v58  ;;  %v1616_v10 = vmul.f32 %v1533_v41, %v270_v58  ;;  %v1625_v15 = vmul.f32 %v1548_v48, %v273_v53  ;;  %2008 = vst [vmem:[#allocation24_spill] sm:$0xff] %v1651_v32 }
 0x190   :  { %v316_v35 = vpop.permute.xlu0 %315  ;;  %v411_v53 = vrot.slane %v286_v9, 4 }
 0x191   :  { %v318_v36 = vpop.permute.xlu1 %317  ;;  %v324_v6 = vsel %vm321_vm2, %v314_v33, %v316_v35 }
 0x192   :  { %v323_v5 = vsel %vm321_vm2, %v316_v35, %v318_v36  ;;  %v1642_v21 = vmul.f32 %v1564_v54, %v324_v6 }
 0x193   :  { %v337_v22 = vmul.f32 %v1551_v49, %v323_v5  ;;  %v1664_v5 = vcombine.high %v1639_v20, %v1639_v20 }
 0x194   :  { %v320_v38 = vpop.permute.xlu0 %319  ;;  %v421_v9 = vrot.slane %v1642_v21, 4 }
 0x195   :  { %v1529_v39 = vpop.permute.xlu1 %234  ;;  %v322_v11 = vsel %vm321_vm2, %v318_v36, %v320_v38  ;;  %v325_v12 = vsel %vm321_vm2, %v320_v38, %v314_v33  ;;  %v1658_v36 = vcombine.high %v1651_v32, %v1651_v32  ;;  %v422_v38 = vrot.slane %v337_v22, 4 }
 0x196   :  { %v335_v33 = vmul.f32 %v1536_v42, %v325_v12  ;;  %v338_v35 = vmul.f32 %v1568_v55, %v322_v11 }
 0x198   :  { %v237_v43 = vpop.permute.xlu0 %236  ;;  %v423_v41 = vrot.slane %v338_v35, 4 }
 0x199   :  { %v239_v44 = vpop.permute.xlu1 %238  ;;  %v247_v12 = vsel %vm244_vm3, %v1529_v39, %v237_v43 }
 0x19a   :  { %v246_v11 = vsel %vm244_vm3, %v237_v43, %v239_v44  ;;  %v258_v21 = vmul.f32 %v1580_v59, %v247_v12  ;;  %v374_v55 = vmul.f32 %v1540_v46, %v247_v12 }
 0x19b   :  { %v259_v22 = vmul.f32 %v1571_v56, %v246_v11 }
 0x19c   :  { %v241_v62 = vpop.permute.xlu0 %240 }
 0x19d   :  { %v288_v63 = vpop.permute.xlu1 %287  ;;  %v245_v24 = vsel %vm244_vm3, %v239_v44, %v241_v62  ;;  %v420_v44 = vrot.slane %v335_v33, 4  ;;  %v375_v33 = vmul.f32 %v1584_v60, %v246_v11 }
 0x19e   :  { %v260_v34 = vmul.f32 %v1588_v61, %v245_v24 }
 0x1a0   :  { %v290_v16 = vpop.permute.xlu0 %289  ;;  %v456_v42 = vsel %vm452_vm4, %v260_v34, %v411_v53 }
 0x1a1   :  { %v292_v26 = vpop.permute.xlu1 %291  ;;  %v1701_v59 = vsel %vm295_vm5, %v288_v63, %v290_v16 }
 0x1a2   :  { %v1676_v58 = vsel %vm295_vm5, %v290_v16, %v292_v26 }
 0x1a3   :  { %v311_v35 = vmul.f32 %v1622_v13, %v1676_v58 }
 0x1a4   :  { %v294_v0 = vpop.permute.xlu0 %293 }
 0x1a5   :  { %v340_v48 = vpop.permute.xlu1 %339  ;;  %v1680_v6 = vsel %vm295_vm5, %v292_v26, %v294_v0  ;;  %v1684_v43 = vsel %vm295_vm5, %v294_v0, %v288_v63  ;;  %v248_v26 = vsel %vm244_vm3, %v241_v62, %v1529_v39 }
 0x1a6   :  { %v312_v61 = vmul.f32 %v1629_v17, %v1680_v6  ;;  %v309_v12 = vmul.f32 %v1555_v51, %v1684_v43  ;;  %v257_v11 = vmul.f32 %v1538_v45, %v248_v26  ;;  %v377_v60 = vmul.f32 %v1592_v1, %v248_v26 }
 0x1a8   :  { %v342_v0 = vpop.permute.xlu0 %341  ;;  %v460_v17 = vsel %vm452_vm4, %v312_v61, %v423_v41 }
 0x1a9   :  { %v264_v46 = vpop.permute.xlu1 %263  ;;  %v350_v39 = vsel %vm347_vm6, %v340_v48, %v342_v0  ;;  %v1207_v62 = vpack.c.bf16 %v460_v17, %v456_v42  ;;  %v376_v17 = vmul.f32 %v1553_v50, %v245_v24 }
 0x1aa   :  { %v271_v34 = vsel %vm269_vm1, %v264_v46, %v1524_v31  ;;  %v272_v41 = vsel %vm269_vm1, %v1522_v30, %v264_v46  ;;  %v361_v61 = vmul.f32 %v1651_v32, %v350_v39  ;;  %v310_v31 = vmul.f32 %v1597_v2, %v1701_v59 }
 0x1ab   :  { %v284_v63 = vmul.f32 %v1637_v19, %v272_v41  ;;  %v285_v16 = vmul.f32 %v1531_v40, %v271_v34  ;;  %v387_v53 = vmul.f32 %v1612_v8, %v272_v41  ;;  %v388_v42 = vmul.f32 %v1649_v29, %v271_v34  ;;  %1208 = vmatprep.subr.bf16.mxu1 %v1207_v62 }
 0x1ac   :  { %v459_v30 = vsel %vm452_vm4, %v311_v35, %v422_v38  ;;  %v346_v46 = vpop.permute.xlu0 %345  ;;  %v457_v39 = vsel %vm452_vm4, %v309_v12, %v420_v44  ;;  %v432_v13 = vrot.slane %v361_v61, 4 }
 0x1ad   :  { %v409_v32 = vrot.slane %v284_v63, 4  ;;  %v410_v51 = vrot.slane %v285_v16, 4  ;;  %v344_v56 = vpop.permute.xlu1 %343  ;;  %v444_v41 = vrot.slane %v387_v53, 4  ;;  %v351_v26 = vsel %vm347_vm6, %v346_v46, %v340_v48 }
 0x1ae   :  { %v349_v62 = vsel %vm347_vm6, %v342_v0, %v344_v56  ;;  %v348_v24 = vsel %vm347_vm6, %v344_v56, %v346_v46  ;;  %v445_v34 = vrot.slane %v388_v42, 4  ;;  %v364_v12 = vmul.f32 %v1664_v5, %v351_v26 }
 0x1af   :  { %v455_v38 = vsel %vm452_vm4, %v259_v22, %v410_v51  ;;  %v362_v35 = vmul.f32 %v1658_v36, %v349_v62  ;;  %v363_v44 = vmul.f32 %v1639_v20, %v348_v24  ;;  %v454_v61 = vsel %vm452_vm4, %v258_v21, %v409_v32 }
 0x1b0   :  { %v458_v63 = vsel %vm452_vm4, %v310_v31, %v421_v9  ;;  %v1209_v0 = vpack.c.bf16 %v459_v30, %v455_v38  ;;  %v2009_v16 = vrot.slane %v1602_v4, 4  ;;  %v2010_v51 = vrot.slane %v1616_v10, 4 }
 0x1b1   :  { %v433_v53 = vrot.slane %v362_v35, 4  ;;  %v434_v48 = vrot.slane %v363_v44, 4  ;;  %v1199_v42 = vpack.c.bf16 %v458_v63, %v454_v61  ;;  %v461_v46 = vsel %vm452_vm4, %v1473_v23, %v432_v13 }
 0x1b2   :  { %v453_v56 = vsel %vm452_vm4, %v257_v11, %v2009_v16  ;;  %v467_v22 = vsel %vm452_vm4, %v376_v17, %v2010_v51  ;;  %v435_v62 = vrot.slane %v364_v12, 4  ;;  %1210 = vmatpush1.bf16.msra.mxu1 %v1209_v0  ;;  %v465_v9 = vsel %vm452_vm4, %v374_v55, %v444_v41 }
 0x1b3   :  { %v1201_v32 = vpack.c.bf16 %v457_v39, %v453_v56  ;;  %v463_v4 = vsel %vm452_vm4, %v1475_v25, %v434_v48  ;;  %1200 = vmatprep.subr.bf16.mxu0 %v1199_v42  ;;  %v462_v21 = vsel %vm452_vm4, %v1487_v28, %v433_v53  ;;  %v466_v11 = vsel %vm452_vm4, %v375_v33, %v445_v34 }
 0x1b4   :  { %v1203_v10 = vpack.c.bf16 %v466_v11, %v462_v21  ;;  %v464_v17 = vsel %vm452_vm4, %v1481_v27, %v435_v62  ;;  %v2011_v23 = vrot.slane %v1625_v15, 4  ;;  %v1213_v31 = vpack.c.bf16 %v467_v22, %v463_v4  ;;  %v469_v15 = vld [vmem:[%s1973_s2] sm:$0xf] }
 0x1b5   :  { %1202 = vmatpush1.bf16.msra.mxu0 %v1201_v32  ;;  %v1205_v30 = vpack.c.bf16 %v465_v9, %v461_v46  ;;  %v401_v25 = vmul.f32 %v1610_v7, %v1676_v58  ;;  %v403_v28 = vmul.f32 %v1633_v18, %v1684_v43  ;;  %v400_v27 = vmul.f32 %v1573_v57, %v1701_v59 }
 0x1b6   :  { %v468_v13 = vsel %vm452_vm4, %v377_v60, %v2011_v23  ;;  %1204 = vmatprep.subr.bf16.mxu0 %v1203_v10  ;;  %v402_v60 = vmul.f32 %v1599_v3, %v1680_v6  ;;  %v2012_v58 = vmov 0.0   ;;  %v1376_v61 = vmov 2  }
 0x1b7   :  { %v1211_v55 = vpack.c.bf16 %v468_v13, %v464_v17  ;;  %1250 = vset.pattern.permute.xlu0 %v1376_v61 }
 0x1b9   :  { %1212 = vmatprep.subr.bf16.mxu1 %v1211_v55  ;;  %1206 = vmatpush1.bf16.msra.mxu0 %v1205_v30 }
 0x1ba   :  { %1214 = vmatpush1.bf16.msra.mxu1 %v1213_v31  ;;  %1173 = vmatprep.subr.msk.mxu0 %vm452_vm4, %v401_v25  ;;  %v2013_v25 = vld [vmem:[#allocation13_spill] sm:$0xff] }
 0x1bb   :  { %1176 = vmatprep.subr.msk.mxu1 %vm452_vm4, %v403_v28 }
 0x1bd   :  { %1174 = vmatpush1.msk.msra.mxu0 %vm452_vm4, %v400_v27 }
 0x1be   :  { %1177 = vmatpush1.msk.msra.mxu1 %vm452_vm4, %v402_v60  ;;  %1175 = vmatmul.mubr.msk.f32.vlgmr.msra.gmra.mrb[2].mxu0 %vm474_vm7, %v469_v15  ;;  %v472_v59 = vpop.permute.xlu1 %471 }
 0x1bf   :  { %1178 = vmatmul.mubr.msk.f32.vlgmr.msra.gmra.mrb[2].mxu1 %vm474_vm7, %v469_v15  ;;  %876 = vmatprep.mubr.f32.mxu0 %v2012_v58 }
 0x1c0   :  { %947 = vmatprep.mubr.f32.mxu1 %v2012_v58 }
 0x291   :  { %v556_v43 = vpop.f32.mrb[2].mxu0 }
 0x292   :  { %v627_v6 = vpop.f32.mrb[2].mxu1  ;;  %v557_v33 = vadd.f32 %v556_v43, %v472_v59  ;;  %v558_v39 = vpop.f32.mrb[3].mxu0 }
 0x293   :  { %v629_v41 = vpop.f32.mrb[3].mxu1  ;;  %v559_v24 = vadd.f32 %v558_v39, %v472_v59  ;;  %v628_v34 = vadd.f32 %v627_v6, %v472_v59  ;;  %v2014_v6 = vld [vmem:[#allocation17_spill] sm:$0xff]  ;;  %v2015_v39 = vld [vmem:[#allocation19_spill] sm:$0xff] }
 0x294   :  { %v1775_v26 = vmax.f32 %v557_v33, 0.0  ;;  %v630_v35 = vadd.f32 %v629_v41, %v472_v59 }
 0x295   :  { %v1777_v38 = vmax.f32 %v559_v24, 0.0  ;;  %v1783_v44 = vmax.f32 %v628_v34, 0.0 }
 0x296   :  { %652 = vrot.lane.b32.xlu0 %v1775_v26, %s1370_s15  ;;  %v1785_v12 = vmax.f32 %v630_v35, 0.0 }
 0x297   :  { %654 = vrot.lane.b32.xlu1 %v1777_v38, %s1370_s15 }
 0x29a   :  { %656 = vrot.lane.b32.xlu0 %v1783_v44, %s1370_s15 }
 0x29b   :  { %658 = vrot.lane.b32.xlu1 %v1785_v12, %s1370_s15 }
 0x29e   :  { %684 = vrot.lane.b32.xlu0 %v1775_v26, %s1371_s16 }
 0x29f   :  { %686 = vrot.lane.b32.xlu1 %v1777_v38, %s1371_s16 }
 0x2a2   :  { %688 = vrot.lane.b32.xlu0 %v1783_v44, %s1371_s16 }
 0x2a3   :  { %690 = vrot.lane.b32.xlu1 %v1785_v12, %s1371_s16 }
 0x2a6   :  { %636 = vrot.lane.b32.xlu0 %v1775_v26, %s1372_s17 }
 0x2a7   :  { %638 = vrot.lane.b32.xlu1 %v1777_v38, %s1372_s17 }
 0x2aa   :  { %640 = vrot.lane.b32.xlu0 %v1783_v44, %s1372_s17 }
 0x2ab   :  { %642 = vrot.lane.b32.xlu1 %v1785_v12, %s1372_s17 }
 0x2ae   :  { %668 = vrot.lane.b32.xlu0 %v1775_v26, %s1373_s18 }
 0x2af   :  { %670 = vrot.lane.b32.xlu1 %v1777_v38, %s1373_s18 }
 0x2b2   :  { %672 = vrot.lane.b32.xlu0 %v1783_v44, %s1373_s18 }
 0x2b3   :  { %674 = vrot.lane.b32.xlu1 %v1785_v12, %s1373_s18 }
 0x2b6   :  { %700 = vrot.lane.b32.xlu0 %v1775_v26, %s1374_s19 }
 0x2b7   :  { %702 = vrot.lane.b32.xlu1 %v1777_v38, %s1374_s19 }
 0x2ba   :  { %704 = vrot.lane.b32.xlu0 %v1783_v44, %s1374_s19 }
 0x2bb   :  { %706 = vrot.lane.b32.xlu1 %v1785_v12, %s1374_s19 }
 0x2be   :  { %794 = vperm.xlu0 %1250, %v1468_v14  }
 0x308   :  { %v653_v63 = vpop.permute.xlu0 %652 }
 0x309   :  { %v655_v0 = vpop.permute.xlu1 %654 }
 0x30a   :  { %v662_v62 = vsel %vm269_vm1, %v653_v63, %v655_v0 }
 0x30b   :  { %v665_v21 = vmul.f32 %v662_v62, %v1637_v19 }
 0x30c   :  { %v657_v16 = vpop.permute.xlu0 %656 }
 0x30d   :  { %v659_v56 = vpop.permute.xlu1 %658  ;;  %v661_v23 = vsel %vm269_vm1, %v655_v0, %v657_v16  ;;  %v733_v15 = vrot.slane %v665_v21, 4 }
 0x30e   :  { %v1830_v9 = vsel %vm269_vm1, %v657_v16, %v659_v56  ;;  %v1834_v14 = vsel %vm269_vm1, %v659_v56, %v653_v63  ;;  %v2016_v56 = vld [vmem:[#allocation21_spill] sm:$0xff] }
 0x30f   :  { %v664_v31 = vmul.f32 %v1834_v14, %v1557_v52  ;;  %v667_v55 = vmul.f32 %v1830_v9, %v1544_v47 }
 0x310   :  { %v685_v53 = vpop.permute.xlu0 %684 }
 0x311   :  { %v687_v48 = vpop.permute.xlu1 %686  ;;  %v732_v34 = vrot.slane %v664_v31, 4  ;;  %v735_v35 = vrot.slane %v667_v55, 4 }
 0x312   :  { %v694_v32 = vsel %vm321_vm2, %v685_v53, %v687_v48 }
 0x313   :  { %v697_v13 = vmul.f32 %v694_v32, %v1564_v54  ;;  %v666_v54 = vmul.f32 %v661_v23, %v1531_v40  ;;  %v2018_v32 = vld [vmem:[#allocation22_spill] sm:$0xff] }
 0x314   :  { %v689_v42 = vpop.permute.xlu0 %688 }
 0x315   :  { %v691_v51 = vpop.permute.xlu1 %690  ;;  %v693_v11 = vsel %vm321_vm2, %v687_v48, %v689_v42  ;;  %v745_v43 = vrot.slane %v697_v13, 4  ;;  %v734_v55 = vrot.slane %v666_v54, 4 }
 0x316   :  { %v695_v10 = vsel %vm321_vm2, %v691_v51, %v685_v53  ;;  %v698_v19 = vmul.f32 %v693_v11, %v1551_v49  ;;  %v692_v30 = vsel %vm321_vm2, %v689_v42, %v691_v51  ;;  %v2019_v11 = vld [vmem:[#allocation16_spill] sm:$0xff] }
 0x317   :  { %v696_v28 = vmul.f32 %v695_v10, %v2013_v25  ;;  %v699_v33 = vmul.f32 %v692_v30, %v2014_v6 }
 0x318   :  { %v637_v22 = vpop.permute.xlu0 %636  ;;  %v746_v61 = vrot.slane %v698_v19, 4 }
 0x319   :  { %v639_v46 = vpop.permute.xlu1 %638  ;;  %v744_v63 = vrot.slane %v696_v28, 4  ;;  %v747_v21 = vrot.slane %v699_v33, 4 }
 0x31a   :  { %v646_v27 = vsel %vm244_vm3, %v637_v22, %v639_v46 }
 0x31b   :  { %v649_v41 = vmul.f32 %v646_v27, %v2015_v39 }
 0x31c   :  { %v641_v4 = vpop.permute.xlu0 %640 }
 0x31d   :  { %v643_v17 = vpop.permute.xlu1 %642  ;;  %v645_v24 = vsel %vm244_vm3, %v639_v46, %v641_v4  ;;  %v777_v31 = vsel %vm452_vm4, %v649_v41, %v733_v15  ;;  %v720_v41 = vmul.f32 %v662_v62, %v1612_v8 }
 0x31e   :  { %v644_v52 = vsel %vm244_vm3, %v641_v4, %v643_v17  ;;  %v647_v47 = vsel %vm244_vm3, %v643_v17, %v637_v22  ;;  %v2017_v22 = vld [vmem:[#allocation18_spill] sm:$0xff]  ;;  %v2020_v17 = vld [vmem:[#allocation23_spill] sm:$0xff] }
 0x31f   :  { %v648_v16 = vmul.f32 %v647_v47, %v1538_v45  ;;  %v651_v53 = vmul.f32 %v644_v52, %v2016_v56  ;;  %v650_v46 = vmul.f32 %v645_v24, %v2017_v22  ;;  %v2025_v22 = vld [vmem:[#allocation20_spill] sm:$0xff] }
 0x320   :  { %v669_v60 = vpop.permute.xlu0 %668 }
 0x321   :  { %v671_v59 = vpop.permute.xlu1 %670  ;;  %v776_v28 = vsel %vm452_vm4, %v648_v16, %v732_v34  ;;  %v778_v33 = vsel %vm452_vm4, %v650_v46, %v734_v55  ;;  %v2023_v16 = vld [vmem:[#allocation15_spill] sm:$0xff]  ;;  %v717_v46 = vmul.f32 %v645_v24, %v2025_v22 }
 0x322   :  { %v1861_v49 = vsel %vm295_vm5, %v669_v60, %v671_v59  ;;  %v723_v56 = vmul.f32 %v1834_v14, %v2023_v16 }
 0x323   :  { %v681_v40 = vmul.f32 %v1861_v49, %v1597_v2 }
 0x324   :  { %v673_v0 = vpop.permute.xlu0 %672 }
 0x325   :  { %v1873_v48 = vsel %vm295_vm5, %v671_v59, %v673_v0  ;;  %v675_v42 = vpop.permute.xlu1 %674  ;;  %v781_v51 = vsel %vm452_vm4, %v681_v40, %v745_v43  ;;  %v2021_v40 = vld [vmem:[#allocation24_spill] sm:$0xff] }
 0x326   :  { %v682_v2 = vmul.f32 %v1873_v48, %v2018_v32  ;;  %v1881_v4 = vsel %vm295_vm5, %v673_v0, %v675_v42  ;;  %v679_v45 = vsel %vm295_vm5, %v675_v42, %v669_v60  ;;  %v1215_v30 = vpack.c.bf16 %v781_v51, %v777_v31  ;;  %v2022_v0 = vld [vmem:[#allocation12_spill] sm:$0xff]  ;;  %v2024_v42 = vld [vmem:[#allocation14_spill] sm:$0xff] }
 0x327   :  { %v680_v10 = vmul.f32 %v679_v45, %v2019_v11  ;;  %v683_v13 = vmul.f32 %v1881_v4, %v2020_v17  ;;  %v779_v60 = vsel %vm452_vm4, %v651_v53, %v735_v35  ;;  %v722_v35 = vmul.f32 %v1830_v9, %v2022_v0 }
 0x328   :  { %v782_v19 = vsel %vm452_vm4, %v682_v2, %v746_v61  ;;  %v701_v25 = vpop.permute.xlu0 %700  ;;  %1216 = vmatprep.subr.bf16.mxu0 %v1215_v30  ;;  %v716_v51 = vmul.f32 %v646_v27, %v2024_v42  ;;  %v719_v27 = vmul.f32 %v647_v47, %v1592_v1 }
 0x329   :  { %v780_v59 = vsel %vm452_vm4, %v680_v10, %v744_v63  ;;  %v703_v43 = vpop.permute.xlu1 %702  ;;  %v783_v6 = vsel %vm452_vm4, %v683_v13, %v747_v21  ;;  %v1225_v34 = vpack.c.bf16 %v782_v19, %v778_v33  ;;  %v721_v63 = vmul.f32 %v661_v23, %v1649_v29 }
 0x32a   :  { %v710_v15 = vsel %vm347_vm6, %v701_v25, %v703_v43  ;;  %v1217_v54 = vpack.c.bf16 %v780_v59, %v776_v28  ;;  %v1223_v39 = vpack.c.bf16 %v783_v6, %v779_v60  ;;  %v718_v29 = vmul.f32 %v644_v52, %v1553_v50 }
 0x32b   :  { %v712_v61 = vmul.f32 %v710_v15, %v2021_v40  ;;  %v768_v21 = vrot.slane %v720_v41, 4  ;;  %v769_v11 = vrot.slane %v721_v63, 4  ;;  %v770_v10 = vrot.slane %v722_v35, 4 }
 0x32c   :  { %1218 = vmatpush1.bf16.msra.mxu0 %v1217_v54  ;;  %1224 = vmatprep.subr.bf16.mxu1 %v1223_v39  ;;  %v705_v53 = vpop.permute.xlu0 %704  ;;  %v771_v13 = vrot.slane %v723_v56, 4  ;;  %v725_v28 = vmul.f32 %v1873_v48, %v1610_v7  ;;  %v726_v7 = vmul.f32 %v1881_v4, %v1599_v3  ;;  %v76_v54 = vld [vmem:[%s1975_s4] sm:$0x1]  ;;  %v1378_v41 = vmov 1966171168   ;;  %s1379_s4 = smov [#allocation8]  }
 0x32d   :  { %v756_v32 = vrot.slane %v712_v61, 4  ;;  %v709_v8 = vsel %vm347_vm6, %v703_v43, %v705_v53  ;;  %v707_v62 = vpop.permute.xlu1 %706  ;;  %1226 = vmatpush1.bf16.msra.mxu1 %v1225_v34  ;;  %v788_v31 = vsel %vm452_vm4, %v716_v51, %v768_v21  ;;  %v790_v37 = vsel %vm452_vm4, %v718_v29, %v770_v10 }
 0x32e   :  { %v713_v9 = vmul.f32 %v709_v8, %v1658_v36  ;;  %v708_v14 = vsel %vm347_vm6, %v705_v53, %v707_v62  ;;  %v711_v23 = vsel %vm347_vm6, %v707_v62, %v701_v25  ;;  %v1128_v40 = vunpack.c.l.s4 %v1378_v41 }
 0x32f   :  { %v714_v24 = vmul.f32 %v708_v14, %v1639_v20  ;;  %v715_v2 = vmul.f32 %v711_v23, %v1664_v5  ;;  %v784_v50 = vsel %vm452_vm4, %v1775_v26, %v756_v32  ;;  %v789_v20 = vsel %vm452_vm4, %v717_v46, %v769_v11 }
 0x330   :  { %v757_v17 = vrot.slane %v713_v9, 4  ;;  %v791_v26 = vsel %vm452_vm4, %v719_v27, %v771_v13  ;;  %v1221_v19 = vpack.c.bf16 %v788_v31, %v784_v50  ;;  %v1129_v34 = vunpack.c.0.s8 %v1128_v40 }
 0x331   :  { %v758_v36 = vrot.slane %v714_v24, 4  ;;  %v759_v52 = vrot.slane %v715_v2, 4  ;;  %v2026_v63 = vlaneseq }
 0x332   :  { %v785_v1 = vsel %vm452_vm4, %v1777_v38, %v757_v17  ;;  %v727_v38 = vmul.f32 %v679_v45, %v1633_v18  ;;  %v1377_v18 = vmov 3  }
 0x333   :  { %v786_v5 = vsel %vm452_vm4, %v1783_v44, %v758_v36  ;;  %v1219_v47 = vpack.c.bf16 %v789_v20, %v785_v1  ;;  %v787_v55 = vsel %vm452_vm4, %v1785_v12, %v759_v52  ;;  %v724_v44 = vmul.f32 %v1861_v49, %v1573_v57  ;;  %v792_v12 = vld [vmem:[%s1974_s3] sm:$0xf]  ;;  %1251 = vset.pattern.permute.xlu1 %v1377_v18 }
 0x334   :  { %v1227_v30 = vpack.c.bf16 %v791_v26, %v787_v55  ;;  %v1229_v25 = vpack.c.bf16 %v790_v37, %v786_v5  ;;  %v78_v57 = vld [vmem:[%s1976_s5] sm:$0x1]  ;;  %1252 = vset.pattern.permute.xlu0 %v1377_v18  ;;  %v1131_v0 = vshrl.u32 %v2026_v63, 7  ;;  %s1161_s5 = sshll.u32 %s1379_s4, 4  ;;  %vm1152_vm9 = vcmp.lt.s32.totalorder %v2026_v63, 512  ;;  %s1162_s5 = int_to_ptr.vmem [resolvable:$true] %s1161_s5 }
 0x335   :  { %1220 = vmatprep.subr.bf16.mxu0 %v1219_v47  ;;  %960 = vperm.xlu1 %1251, %v78_v57   ;;  %s1335_s25 = scalar_lea.vmem %s1162_s5, 64  ;;  %p1340_p11 = scmp.lt.s32.totalorder %s1162_s5, %s1162_s5 }
 0x336   :  { %1222 = vmatpush1.bf16.msra.mxu0 %v1221_v19  ;;  %1228 = vmatprep.subr.bf16.mxu1 %v1227_v30  ;;  %v1132_v22 = vsub.s32 %v1129_v34, %v1131_v0  ;;  %p1336_p10 = scmp.ne.s32.totalorder %s1162_s5, %s1335_s25  ;;  %p1341_p12 = scmp.lt.s32.totalorder %s1335_s25, %s1335_s25 }
 0x337   :  { %1179 = vmatprep.subr.msk.mxu0 %vm452_vm4, %v725_v28  ;;  %1230 = vmatpush1.bf16.msra.mxu1 %v1229_v25 }
 0x338   :  { %1182 = vmatprep.subr.msk.mxu1 %vm452_vm4, %v727_v38  ;;  %p1342_p13 = por %p1341_p12, %p1340_p11 }
 0x33a   :  { %1180 = vmatpush1.msk.msra.mxu0 %vm452_vm4, %v724_v44  ;;  %p1343_p0 = pnand %p1342_p13, %p1336_p10 }
 0x33b   :  { %1181 = vmatmul.mubr.msk.f32.vlgmr.msra.gmra.mrb[4].mxu0 %vm474_vm7, %v792_v12  ;;  %1183 = vmatpush1.msk.msra.mxu1 %vm452_vm4, %v726_v7 }
 0x33c   :  { %1184 = vmatmul.mubr.msk.f32.vlgmr.msra.gmra.mrb[4].mxu1 %vm474_vm7, %v792_v12  ;;  %1043 = vmatprep.mubr.f32.mxu0 %v2012_v58 }
 0x33d   :  { %1114 = vmatprep.mubr.f32.mxu1 %v2012_v58  ;;  %v795_v3 = vpop.permute.xlu0 %794 }
 0x3b4   :  { %v961_v61 = vpop.permute.xlu1 %960 }
 0x40e   :  { %v878_v49 = vpop.f32.mrb[4].mxu0 }
 0x40f   :  { %v880_v48 = vpop.f32.mrb[5].mxu0  ;;  %v949_v4 = vpop.f32.mrb[4].mxu1  ;;  %v879_v45 = vadd.f32 %v878_v49, %v795_v3 }
 0x410   :  { %v881_v59 = vadd.f32 %v880_v48, %v795_v3  ;;  %v950_v43 = vadd.f32 %v949_v4, %v795_v3  ;;  %v951_v60 = vpop.f32.mrb[5].mxu1 }
 0x411   :  { %v954_v6 = vmax.f32 %v879_v45, 0.0  ;;  %v952_v33 = vadd.f32 %v951_v60, %v795_v3 }
 0x412   :  { %v955_v15 = vmax.f32 %v881_v59, 0.0  ;;  %v956_v39 = vmax.f32 %v950_v43, 0.0 }
 0x413   :  { %v957_v58 = vmax.f32 %v952_v33, 0.0 }
 0x414   :  { %1185 = vmatprep.subr.msk.mxu0 %vm452_vm4, %v955_v15 }
 0x415   :  { %1186 = vmatpush1.msk.msra.mxu0 %vm452_vm4, %v954_v6  ;;  %1188 = vmatprep.subr.msk.mxu1 %vm452_vm4, %v957_v58 }
 0x416   :  { %1189 = vmatpush1.msk.msra.mxu1 %vm452_vm4, %v956_v39  ;;  %1187 = vmatmul.mubr.msk.f32.vlgmr.msra.gmra.mrb[6].mxu0 %vm963_vm8, %v76_v54 }
 0x417   :  { %1190 = vmatmul.mubr.msk.f32.vlgmr.msra.gmra.mrb[6].mxu1 %vm963_vm8, %v76_v54 }
 0x4e9   :  { %v1045_v35 = vpop.f32.mrb[6].mxu0 }
 0x4ea   :  { %v1116_v16 = vpop.f32.mrb[6].mxu1  ;;  %v1046_v56 = vadd.f32 %v1045_v35, %v961_v61  ;;  %v1047_v53 = vpop.f32.mrb[7].mxu0 }
 0x4eb   :  { %v1117_v42 = vadd.f32 %v1116_v16, %v961_v61  ;;  %v1048_v51 = vadd.f32 %v1047_v53, %v961_v61  ;;  %v1118_v46 = vpop.f32.mrb[7].mxu1 }
 0x4ec   :  { %v1119_v32 = vadd.f32 %v1118_v46, %v961_v61 }
 0x4ed   :  { %v1125_v8 = vcombine.low %v1046_v56, %v1048_v51 }
 0x4ee   :  { %v1126_v62 = vcombine.low %v1117_v42, %v1119_v32 }
 0x4ef   :  { %v1133_v29 = vrot.slane %v1125_v8, %v1132_v22 }
 0x4f0   :  { %v1140_v9 = vrot.slane %v1126_v62, %v1132_v22 }
 0x4f2   :  { %v1141_v14 = vcombine.low %v1133_v29, %v1140_v9 }
 0x4f4   :  { %v1148_v23 = vrot.slane %v1141_v14, %v1132_v22 }
 0x4f6   :  { %1154 = vst.msk [vmem:[#allocation8] sm:$0xf] %vm1152_vm9, %v1148_v23 }
 0x4f7   :  { %1346 = shalt.err (!%p1343_p0)
}
 0x4f8   :  { %s1347_s29 = scalar_lea.hbm %s1978_s7, 64 }
 0x4f9   :  { %p1348_p1 = scmp.ne.s32.totalorder %s1978_s7, %s1347_s29  ;;  %p1351_p2 = scmp.lt.u32.totalorder %s1347_s29, %s1978_s7 }
 0x4fb   :  { %p1353_p3 = pnand %p1351_p2, %p1348_p1 }
 0x4fd   :  { %1356 = shalt.err (!%p1353_p3)
}
 0x4fe   :  { %1164 = dma.vmem_to_hbm [thread:$0]  %s1162_s5, 64, %s1978_s7, [#allocation4]  }
 0x4ff   :  { %1361 = dma.done.wait [#allocation4], 64  }
 0x500   :  { %1362 = vsyncadd [#allocation4], 4294967232 }
 0x501   :  { %1168 = vsyncpa [#allocation3], 1 }
 0x502   :  { %1169 = vsyncpa [#allocation6], 1 }
 0x503   :  { %1170 = vsyncpa [#allocation4], 1 }

</bundles_post_ra>
